<compile_context>
chip_gen: v7x
topology: tpu7x:2x2x1
jax: 0.10.0
libtpu: 0.0.40
codegen_flags: <defaults>
</compile_context>

<pallas_src>
import functools

import jax
import jax.numpy as jnp
from jax.experimental import pallas as pl
from jax.experimental.pallas import tpu as pltpu

# ---- static module configuration (matches the nn.Module constructor args) ----
IN_PLANES = 4
OUT_PLANES = 16          # GroupNorm(8, out_planes) -> must be divisible by 8
KERNEL_SIZE = 3
STRIDE = 1
PADDING = 1
DILATION = 1
NUM_GROUPS = 8           # spec: torch.nn.GroupNorm(8, out_planes)
GN_EPS = 1e-5

_LANES = 128
_SUBLANES = 8


def _round_up(x, m):
    return -(-x // m) * m


def _conv_gn_relu_kernel(x_ref, w_ref, gb_ref, mask_ref, agg_ref, o_ref, xcol_ref, *,
                         taps, batch, cin_pad, inv_count, eps):
    """Single grid step = whole batch.

    x_ref    : (N, Cin_pad, L_IN)        zero-padded images, spatially flattened
    w_ref    : (Cout, KH*KW*Cin_pad)     tap-stacked weight matrix
    gb_ref   : (2, Cout, 1)              [gamma ; beta]
    mask_ref : (1, L_OUT)                1.0 on valid output lanes, 0.0 on padding lanes
    agg_ref  : (Cout, Cout)              1.0 where two channels share a group
    o_ref    : (N, Cout, L_OUT)          output on the padded flat grid
    xcol_ref : (KH*KW*Cin_pad, N*L_OUT)  VMEM scratch for the stacked taps
    """
    cout = o_ref.shape[1]
    l_out = o_ref.shape[2]

    # --- stack the KH*KW lane-shifted taps (all samples) into the im2col scratch ---
    # Row offsets t*cin_pad are 8-sublane aligned; column offsets b*l_out are
    # 128-lane aligned.  Static unroll: batch * KH*KW = 18 small aligned copies.
    for b in range(batch):
        for t, s in enumerate(taps):
            xcol_ref[t * cin_pad:(t + 1) * cin_pad, b * l_out:(b + 1) * l_out] = \
                x_ref[b, :, s:s + l_out]

    # --- convolution: ONE MXU matmul (Cout, K) @ (K, N*L_OUT), K = KH*KW*Cin_pad ---
    y = jnp.dot(w_ref[...], xcol_ref[...], preferred_element_type=jnp.float32)

    mask = mask_ref[...]                          # (1, L_OUT)
    agg = agg_ref[...]                            # (Cout, Cout)
    gamma = gb_ref[0]                             # (Cout, 1)
    beta = gb_ref[1]                              # (Cout, 1)

    # --- GroupNorm + ReLU per sample: lane-sum first, then tiny group-agg matmul ---
    for b in range(batch):
        yb = y[:, b * l_out:(b + 1) * l_out]      # (Cout, L_OUT), 128-aligned slice
        ym = yb * mask
        s1 = jnp.sum(ym, axis=-1, keepdims=True)            # (Cout, 1) masked sum
        s2 = jnp.sum(ym * ym, axis=-1, keepdims=True)        # (Cout, 1) masked sum sq
        g = jnp.dot(agg, jnp.concatenate([s1, s2], axis=1),  # (Cout, 2) group sums
                    preferred_element_type=jnp.float32)
        mean = g[:, 0:1] * inv_count                          # (Cout, 1)
        var = g[:, 1:2] * inv_count - mean * mean             # single-pass variance
        inv = jax.lax.rsqrt(var + eps)
        scale = gamma * inv                                   # gamma * inv
        shift = beta - mean * scale                           # beta - mean * scale
        o_ref[b] = jnp.maximum(yb * scale + shift, 0.0)       # fused affine + ReLU


@jax.jit
def basic_conv2d_forward(x, weight, gamma, beta):
    """x: (N, Cin, H, W) f32 NCHW. Returns (N, Cout, H_out, W_out) NCHW."""
    N, Cin, H, W = x.shape
    Cout, _, KH, KW = weight.shape
    assert STRIDE == 1, "shifted-tap flat conv assumes stride 1"
    assert Cout % NUM_GROUPS == 0

    P, D = PADDING, DILATION
    Hp, Wp = H + 2 * P, W + 2 * P
    Ho = (H + 2 * P - D * (KH - 1) - 1) // STRIDE + 1
    Wo = (W + 2 * P - D * (KW - 1) - 1) // STRIDE + 1
    cpg = Cout // NUM_GROUPS
    cin_pad = _round_up(Cin, _SUBLANES)

    taps = tuple(kh * D * Wp + kw * D for kh in range(KH) for kw in range(KW))
    L_OUT = _round_up(Ho * Wp, _LANES)                   # lane-dense output width
    L_IN = _round_up(max(Hp * Wp, L_OUT + max(taps)), _LANES)
    K = KH * KW * cin_pad

    # ---- glue (data movement only, fused under jit): pad channels + spatial, flatten ----
    xp = jnp.pad(x.astype(jnp.float32),
                 ((0, 0), (0, cin_pad - Cin), (P, P), (P, P)))
    xflat = jnp.pad(xp.reshape(N, cin_pad, Hp * Wp),
                    ((0, 0), (0, 0), (0, L_IN - Hp * Wp)))

    wpad = jnp.pad(weight.astype(jnp.float32),
                   ((0, 0), (0, cin_pad - Cin), (0, 0), (0, 0)))
    # (Cout, Cin_pad, KH, KW) -> (Cout, KH, KW, Cin_pad) -> (Cout, K); matches tap order.
    w2d = jnp.transpose(wpad, (0, 2, 3, 1)).reshape(Cout, K)

    gb = jnp.stack([gamma, beta]).reshape(2, Cout, 1).astype(jnp.float32)

    pos = jnp.arange(L_OUT)
    mask = (((pos // Wp) < Ho) & ((pos % Wp) < Wo)).astype(jnp.float32)
    mask = mask.reshape(1, L_OUT)

    ch_group = jnp.arange(Cout) // cpg
    agg = (ch_group[:, None] == ch_group[None, :]).astype(jnp.float32)

    kernel = functools.partial(
        _conv_gn_relu_kernel,
        taps=taps,
        batch=N,
        cin_pad=cin_pad,
        inv_count=1.0 / float(cpg * Ho * Wo),
        eps=GN_EPS)

    cost = pl.CostEstimate(
        flops=2 * Cout * K * N * L_OUT + 2 * Cout * Cout * 2 * N,
        transcendentals=N * Cout,
        bytes_accessed=4 * (N * cin_pad * L_IN + Cout * K + N * Cout * L_OUT))

    out_flat = pl.pallas_call(
        kernel,
        out_shape=jax.ShapeDtypeStruct((N, Cout, L_OUT), jnp.float32),
        grid_spec=pltpu.PrefetchScalarGridSpec(
            num_scalar_prefetch=0,
            grid=(1,),                               # one step: whole batch fused
            in_specs=[
                pl.BlockSpec((N, cin_pad, L_IN), lambda i: (0, 0, 0)),
                pl.BlockSpec((Cout, K), lambda i: (0, 0)),
                pl.BlockSpec((2, Cout, 1), lambda i: (0, 0, 0)),
                pl.BlockSpec((1, L_OUT), lambda i: (0, 0)),
                pl.BlockSpec((Cout, Cout), lambda i: (0, 0)),
            ],
            out_specs=pl.BlockSpec((N, Cout, L_OUT), lambda i: (0, 0, 0)),
            scratch_shapes=[pltpu.VMEM((K, N * L_OUT), jnp.float32)],
        ),
        compiler_params=pltpu.CompilerParams(
            dimension_semantics=("arbitrary",)),
        cost_estimate=cost,
    )(xflat, w2d, gb, mask, agg)

    # Valid outputs live at flat index i*Wp + j; un-flatten and drop padding columns.
    out = out_flat[:, :, :Ho * Wp].reshape(N, Cout, Ho, Wp)[:, :, :, :Wo]
    return out


def _reference(x, weight, gamma, beta):
    """Pure-JAX reference (conv -> GroupNorm(8) -> relu), NCHW."""
    y = jax.lax.conv_general_dilated(
        x, weight,
        window_strides=(STRIDE, STRIDE),
        padding=[(PADDING, PADDING), (PADDING, PADDING)],
        rhs_dilation=(DILATION, DILATION),
        dimension_numbers=("NCHW", "OIHW", "NCHW"),
        precision=jax.lax.Precision.HIGHEST)
    N, C, H, W = y.shape
    cpg = C // NUM_GROUPS
    yg = y.reshape(N, NUM_GROUPS, cpg, H, W)
    mean = yg.mean(axis=(2, 3, 4), keepdims=True)
    var = ((yg - mean) ** 2).mean(axis=(2, 3, 4), keepdims=True)
    yn = ((yg - mean) / jnp.sqrt(var + GN_EPS)).reshape(N, C, H, W)
    yn = yn * gamma.reshape(1, C, 1, 1) + beta.reshape(1, C, 1, 1)
    return jnp.maximum(yn, 0.0)


if __name__ == "__main__":
    key = jax.random.PRNGKey(0)
    kx, kw, kg, kb = jax.random.split(key, 4)

    N, H, W = 2, 16, 16
    x = jax.random.normal(kx, (N, IN_PLANES, H, W), dtype=jnp.float32)
    weight = 0.1 * jax.random.normal(
        kw, (OUT_PLANES, IN_PLANES, KERNEL_SIZE, KERNEL_SIZE), dtype=jnp.float32)
    gamma = 1.0 + 0.1 * jax.random.normal(kg, (OUT_PLANES,), dtype=jnp.float32)
    beta = 0.1 * jax.random.normal(kb, (OUT_PLANES,), dtype=jnp.float32)

    out = jax.block_until_ready(basic_conv2d_forward(x, weight, gamma, beta))
    ref = jax.block_until_ready(_reference(x, weight, gamma, beta))

    assert out.shape == (N, OUT_PLANES, H, W)
    assert jnp.allclose(out, ref, rtol=1e-4, atol=1e-4), "mismatch vs reference"

    print("KERNEL_OK")
</pallas_src>

<mosaic_0001>
module attributes {stable_mosaic.version = 11 : i64} {
  func.func @_conv_gn_relu_kernel(%arg0: i32, %arg1: memref<2x8x512xf32, #tpu.memory_space<vmem>>, %arg2: memref<16x72xf32, #tpu.memory_space<vmem>>, %arg3: memref<2x16x1xf32, #tpu.memory_space<vmem>>, %arg4: memref<1x384xf32, #tpu.memory_space<vmem>>, %arg5: memref<16x16xf32, #tpu.memory_space<vmem>>, %arg6: memref<2x16x384xf32, #tpu.memory_space<vmem>>, %arg7: memref<72x768xf32, #tpu.memory_space<vmem>>) attributes {dimension_semantics = [#tpu.dimension_semantics<arbitrary>], iteration_bounds = array<i64: 1>, scalar_prefetch = 0 : i64, scratch_operands = 1 : i64, tpu.core_type = #tpu.core_type<tc>, window_params = [{pipeline_mode = #tpu.pipeline_mode<synchronous>, transform_indices = @transform_0, window_bounds = array<i64: 2, 8, 512>}, {pipeline_mode = #tpu.pipeline_mode<synchronous>, transform_indices = @transform_1, window_bounds = array<i64: 16, 72>}, {pipeline_mode = #tpu.pipeline_mode<synchronous>, transform_indices = @transform_2, window_bounds = array<i64: 2, 16, 1>}, {pipeline_mode = #tpu.pipeline_mode<synchronous>, transform_indices = @transform_3, window_bounds = array<i64: 1, 384>}, {pipeline_mode = #tpu.pipeline_mode<synchronous>, transform_indices = @transform_4, window_bounds = array<i64: 16, 16>}, {pipeline_mode = #tpu.pipeline_mode<synchronous>, transform_indices = @transform_5, window_bounds = array<i64: 2, 16, 384>}]} {
    %c0 = arith.constant 0 : index
    %c0_0 = arith.constant 0 : index
    %c0_1 = arith.constant 0 : index
    %0 = vector.load %arg1[%c0, %c0_0, %c0_1] : memref<2x8x512xf32, #tpu.memory_space<vmem>>, vector<1x8x384xf32>
    %1 = vector.shape_cast %0 : vector<1x8x384xf32> to vector<8x384xf32>
    %c0_2 = arith.constant 0 : index
    %c0_3 = arith.constant 0 : index
    %2 = vector.load %arg7[%c0_2, %c0_3] : memref<72x768xf32, #tpu.memory_space<vmem>>, vector<8x384xf32>
    tpu.vector_store %arg7[%c0_2, %c0_3], %1 {strides = array<i32>} : memref<72x768xf32, #tpu.memory_space<vmem>>, vector<8x384xf32>,
    %c0_4 = arith.constant 0 : index
    %c0_5 = arith.constant 0 : index
    %c1 = arith.constant 1 : index
    %3 = vector.load %arg1[%c0_4, %c0_5, %c1] : memref<2x8x512xf32, #tpu.memory_space<vmem>>, vector<1x8x384xf32>
    %4 = vector.shape_cast %3 : vector<1x8x384xf32> to vector<8x384xf32>
    %c8 = arith.constant 8 : index
    %c0_6 = arith.constant 0 : index
    %5 = vector.load %arg7[%c8, %c0_6] : memref<72x768xf32, #tpu.memory_space<vmem>>, vector<8x384xf32>
    tpu.vector_store %arg7[%c8, %c0_6], %4 {strides = array<i32>} : memref<72x768xf32, #tpu.memory_space<vmem>>, vector<8x384xf32>,
    %c0_7 = arith.constant 0 : index
    %c0_8 = arith.constant 0 : index
    %c2 = arith.constant 2 : index
    %6 = vector.load %arg1[%c0_7, %c0_8, %c2] : memref<2x8x512xf32, #tpu.memory_space<vmem>>, vector<1x8x384xf32>
    %7 = vector.shape_cast %6 : vector<1x8x384xf32> to vector<8x384xf32>
    %c16 = arith.constant 16 : index
    %c0_9 = arith.constant 0 : index
    %8 = vector.load %arg7[%c16, %c0_9] : memref<72x768xf32, #tpu.memory_space<vmem>>, vector<8x384xf32>
    tpu.vector_store %arg7[%c16, %c0_9], %7 {strides = array<i32>} : memref<72x768xf32, #tpu.memory_space<vmem>>, vector<8x384xf32>,
    %c0_10 = arith.constant 0 : index
    %c0_11 = arith.constant 0 : index
    %c18 = arith.constant 18 : index
    %9 = vector.load %arg1[%c0_10, %c0_11, %c18] : memref<2x8x512xf32, #tpu.memory_space<vmem>>, vector<1x8x384xf32>
    %10 = vector.shape_cast %9 : vector<1x8x384xf32> to vector<8x384xf32>
    %c24 = arith.constant 24 : index
    %c0_12 = arith.constant 0 : index
    %11 = vector.load %arg7[%c24, %c0_12] : memref<72x768xf32, #tpu.memory_space<vmem>>, vector<8x384xf32>
    tpu.vector_store %arg7[%c24, %c0_12], %10 {strides = array<i32>} : memref<72x768xf32, #tpu.memory_space<vmem>>, vector<8x384xf32>,
    %c0_13 = arith.constant 0 : index
    %c0_14 = arith.constant 0 : index
    %c19 = arith.constant 19 : index
    %12 = vector.load %arg1[%c0_13, %c0_14, %c19] : memref<2x8x512xf32, #tpu.memory_space<vmem>>, vector<1x8x384xf32>
    %13 = vector.shape_cast %12 : vector<1x8x384xf32> to vector<8x384xf32>
    %c32 = arith.constant 32 : index
    %c0_15 = arith.constant 0 : index
    %14 = vector.load %arg7[%c32, %c0_15] : memref<72x768xf32, #tpu.memory_space<vmem>>, vector<8x384xf32>
    tpu.vector_store %arg7[%c32, %c0_15], %13 {strides = array<i32>} : memref<72x768xf32, #tpu.memory_space<vmem>>, vector<8x384xf32>,
    %c0_16 = arith.constant 0 : index
    %c0_17 = arith.constant 0 : index
    %c20 = arith.constant 20 : index
    %15 = vector.load %arg1[%c0_16, %c0_17, %c20] : memref<2x8x512xf32, #tpu.memory_space<vmem>>, vector<1x8x384xf32>
    %16 = vector.shape_cast %15 : vector<1x8x384xf32> to vector<8x384xf32>
    %c40 = arith.constant 40 : index
    %c0_18 = arith.constant 0 : index
    %17 = vector.load %arg7[%c40, %c0_18] : memref<72x768xf32, #tpu.memory_space<vmem>>, vector<8x384xf32>
    tpu.vector_store %arg7[%c40, %c0_18], %16 {strides = array<i32>} : memref<72x768xf32, #tpu.memory_space<vmem>>, vector<8x384xf32>,
    %c0_19 = arith.constant 0 : index
    %c0_20 = arith.constant 0 : index
    %c36 = arith.constant 36 : index
    %18 = vector.load %arg1[%c0_19, %c0_20, %c36] : memref<2x8x512xf32, #tpu.memory_space<vmem>>, vector<1x8x384xf32>
    %19 = vector.shape_cast %18 : vector<1x8x384xf32> to vector<8x384xf32>
    %c48 = arith.constant 48 : index
    %c0_21 = arith.constant 0 : index
    %20 = vector.load %arg7[%c48, %c0_21] : memref<72x768xf32, #tpu.memory_space<vmem>>, vector<8x384xf32>
    tpu.vector_store %arg7[%c48, %c0_21], %19 {strides = array<i32>} : memref<72x768xf32, #tpu.memory_space<vmem>>, vector<8x384xf32>,
    %c0_22 = arith.constant 0 : index
    %c0_23 = arith.constant 0 : index
    %c37 = arith.constant 37 : index
    %21 = vector.load %arg1[%c0_22, %c0_23, %c37] : memref<2x8x512xf32, #tpu.memory_space<vmem>>, vector<1x8x384xf32>
    %22 = vector.shape_cast %21 : vector<1x8x384xf32> to vector<8x384xf32>
    %c56 = arith.constant 56 : index
    %c0_24 = arith.constant 0 : index
    %23 = vector.load %arg7[%c56, %c0_24] : memref<72x768xf32, #tpu.memory_space<vmem>>, vector<8x384xf32>
    tpu.vector_store %arg7[%c56, %c0_24], %22 {strides = array<i32>} : memref<72x768xf32, #tpu.memory_space<vmem>>, vector<8x384xf32>,
    %c0_25 = arith.constant 0 : index
    %c0_26 = arith.constant 0 : index
    %c38 = arith.constant 38 : index
    %24 = vector.load %arg1[%c0_25, %c0_26, %c38] : memref<2x8x512xf32, #tpu.memory_space<vmem>>, vector<1x8x384xf32>
    %25 = vector.shape_cast %24 : vector<1x8x384xf32> to vector<8x384xf32>
    %c64 = arith.constant 64 : index
    %c0_27 = arith.constant 0 : index
    %26 = vector.load %arg7[%c64, %c0_27] : memref<72x768xf32, #tpu.memory_space<vmem>>, vector<8x384xf32>
    tpu.vector_store %arg7[%c64, %c0_27], %25 {strides = array<i32>} : memref<72x768xf32, #tpu.memory_space<vmem>>, vector<8x384xf32>,
    %c1_28 = arith.constant 1 : index
    %c0_29 = arith.constant 0 : index
    %c0_30 = arith.constant 0 : index
    %27 = vector.load %arg1[%c1_28, %c0_29, %c0_30] : memref<2x8x512xf32, #tpu.memory_space<vmem>>, vector<1x8x384xf32>
    %28 = vector.shape_cast %27 : vector<1x8x384xf32> to vector<8x384xf32>
    %c0_31 = arith.constant 0 : index
    %c384 = arith.constant 384 : index
    %29 = vector.load %arg7[%c0_31, %c384] : memref<72x768xf32, #tpu.memory_space<vmem>>, vector<8x384xf32>
    tpu.vector_store %arg7[%c0_31, %c384], %28 {strides = array<i32>} : memref<72x768xf32, #tpu.memory_space<vmem>>, vector<8x384xf32>,
    %c1_32 = arith.constant 1 : index
    %c0_33 = arith.constant 0 : index
    %c1_34 = arith.constant 1 : index
    %30 = vector.load %arg1[%c1_32, %c0_33, %c1_34] : memref<2x8x512xf32, #tpu.memory_space<vmem>>, vector<1x8x384xf32>
    %31 = vector.shape_cast %30 : vector<1x8x384xf32> to vector<8x384xf32>
    %c8_35 = arith.constant 8 : index
    %c384_36 = arith.constant 384 : index
    %32 = vector.load %arg7[%c8_35, %c384_36] : memref<72x768xf32, #tpu.memory_space<vmem>>, vector<8x384xf32>
    tpu.vector_store %arg7[%c8_35, %c384_36], %31 {strides = array<i32>} : memref<72x768xf32, #tpu.memory_space<vmem>>, vector<8x384xf32>,
    %c1_37 = arith.constant 1 : index
    %c0_38 = arith.constant 0 : index
    %c2_39 = arith.constant 2 : index
    %33 = vector.load %arg1[%c1_37, %c0_38, %c2_39] : memref<2x8x512xf32, #tpu.memory_space<vmem>>, vector<1x8x384xf32>
    %34 = vector.shape_cast %33 : vector<1x8x384xf32> to vector<8x384xf32>
    %c16_40 = arith.constant 16 : index
    %c384_41 = arith.constant 384 : index
    %35 = vector.load %arg7[%c16_40, %c384_41] : memref<72x768xf32, #tpu.memory_space<vmem>>, vector<8x384xf32>
    tpu.vector_store %arg7[%c16_40, %c384_41], %34 {strides = array<i32>} : memref<72x768xf32, #tpu.memory_space<vmem>>, vector<8x384xf32>,
    %c1_42 = arith.constant 1 : index
    %c0_43 = arith.constant 0 : index
    %c18_44 = arith.constant 18 : index
    %36 = vector.load %arg1[%c1_42, %c0_43, %c18_44] : memref<2x8x512xf32, #tpu.memory_space<vmem>>, vector<1x8x384xf32>
    %37 = vector.shape_cast %36 : vector<1x8x384xf32> to vector<8x384xf32>
    %c24_45 = arith.constant 24 : index
    %c384_46 = arith.constant 384 : index
    %38 = vector.load %arg7[%c24_45, %c384_46] : memref<72x768xf32, #tpu.memory_space<vmem>>, vector<8x384xf32>
    tpu.vector_store %arg7[%c24_45, %c384_46], %37 {strides = array<i32>} : memref<72x768xf32, #tpu.memory_space<vmem>>, vector<8x384xf32>,
    %c1_47 = arith.constant 1 : index
    %c0_48 = arith.constant 0 : index
    %c19_49 = arith.constant 19 : index
    %39 = vector.load %arg1[%c1_47, %c0_48, %c19_49] : memref<2x8x512xf32, #tpu.memory_space<vmem>>, vector<1x8x384xf32>
    %40 = vector.shape_cast %39 : vector<1x8x384xf32> to vector<8x384xf32>
    %c32_50 = arith.constant 32 : index
    %c384_51 = arith.constant 384 : index
    %41 = vector.load %arg7[%c32_50, %c384_51] : memref<72x768xf32, #tpu.memory_space<vmem>>, vector<8x384xf32>
    tpu.vector_store %arg7[%c32_50, %c384_51], %40 {strides = array<i32>} : memref<72x768xf32, #tpu.memory_space<vmem>>, vector<8x384xf32>,
    %c1_52 = arith.constant 1 : index
    %c0_53 = arith.constant 0 : index
    %c20_54 = arith.constant 20 : index
    %42 = vector.load %arg1[%c1_52, %c0_53, %c20_54] : memref<2x8x512xf32, #tpu.memory_space<vmem>>, vector<1x8x384xf32>
    %43 = vector.shape_cast %42 : vector<1x8x384xf32> to vector<8x384xf32>
    %c40_55 = arith.constant 40 : index
    %c384_56 = arith.constant 384 : index
    %44 = vector.load %arg7[%c40_55, %c384_56] : memref<72x768xf32, #tpu.memory_space<vmem>>, vector<8x384xf32>
    tpu.vector_store %arg7[%c40_55, %c384_56], %43 {strides = array<i32>} : memref<72x768xf32, #tpu.memory_space<vmem>>, vector<8x384xf32>,
    %c1_57 = arith.constant 1 : index
    %c0_58 = arith.constant 0 : index
    %c36_59 = arith.constant 36 : index
    %45 = vector.load %arg1[%c1_57, %c0_58, %c36_59] : memref<2x8x512xf32, #tpu.memory_space<vmem>>, vector<1x8x384xf32>
    %46 = vector.shape_cast %45 : vector<1x8x384xf32> to vector<8x384xf32>
    %c48_60 = arith.constant 48 : index
    %c384_61 = arith.constant 384 : index
    %47 = vector.load %arg7[%c48_60, %c384_61] : memref<72x768xf32, #tpu.memory_space<vmem>>, vector<8x384xf32>
    tpu.vector_store %arg7[%c48_60, %c384_61], %46 {strides = array<i32>} : memref<72x768xf32, #tpu.memory_space<vmem>>, vector<8x384xf32>,
    %c1_62 = arith.constant 1 : index
    %c0_63 = arith.constant 0 : index
    %c37_64 = arith.constant 37 : index
    %48 = vector.load %arg1[%c1_62, %c0_63, %c37_64] : memref<2x8x512xf32, #tpu.memory_space<vmem>>, vector<1x8x384xf32>
    %49 = vector.shape_cast %48 : vector<1x8x384xf32> to vector<8x384xf32>
    %c56_65 = arith.constant 56 : index
    %c384_66 = arith.constant 384 : index
    %50 = vector.load %arg7[%c56_65, %c384_66] : memref<72x768xf32, #tpu.memory_space<vmem>>, vector<8x384xf32>
    tpu.vector_store %arg7[%c56_65, %c384_66], %49 {strides = array<i32>} : memref<72x768xf32, #tpu.memory_space<vmem>>, vector<8x384xf32>,
    %c1_67 = arith.constant 1 : index
    %c0_68 = arith.constant 0 : index
    %c38_69 = arith.constant 38 : index
    %51 = vector.load %arg1[%c1_67, %c0_68, %c38_69] : memref<2x8x512xf32, #tpu.memory_space<vmem>>, vector<1x8x384xf32>
    %52 = vector.shape_cast %51 : vector<1x8x384xf32> to vector<8x384xf32>
    %c64_70 = arith.constant 64 : index
    %c384_71 = arith.constant 384 : index
    %53 = vector.load %arg7[%c64_70, %c384_71] : memref<72x768xf32, #tpu.memory_space<vmem>>, vector<8x384xf32>
    tpu.vector_store %arg7[%c64_70, %c384_71], %52 {strides = array<i32>} : memref<72x768xf32, #tpu.memory_space<vmem>>, vector<8x384xf32>,
    %c0_72 = arith.constant 0 : index
    %c0_73 = arith.constant 0 : index
    %54 = vector.load %arg2[%c0_72, %c0_73] : memref<16x72xf32, #tpu.memory_space<vmem>>, vector<16x72xf32>
    %c0_74 = arith.constant 0 : index
    %c0_75 = arith.constant 0 : index
    %55 = vector.load %arg7[%c0_74, %c0_75] : memref<72x768xf32, #tpu.memory_space<vmem>>, vector<72x768xf32>
    %cst = arith.constant dense<0.000000e+00> : vector<16x768xf32>
    %56 = tpu.matmul %54, %55, %cst {dimension_numbers = #tpu.dot_dimension_numbers<[1], [0], [0], [1], [0, 0, 1, 1], [], []>} : vector<16x72xf32>, vector<72x768xf32>, vector<16x768xf32> -> vector<16x768xf32>
    %c0_76 = arith.constant 0 : index
    %c0_77 = arith.constant 0 : index
    %57 = vector.load %arg4[%c0_76, %c0_77] : memref<1x384xf32, #tpu.memory_space<vmem>>, vector<1x384xf32>
    %c0_78 = arith.constant 0 : index
    %c0_79 = arith.constant 0 : index
    %58 = vector.load %arg5[%c0_78, %c0_79] : memref<16x16xf32, #tpu.memory_space<vmem>>, vector<16x16xf32>
    %c0_80 = arith.constant 0 : index
    %c0_81 = arith.constant 0 : index
    %c0_82 = arith.constant 0 : index
    %59 = vector.load %arg3[%c0_80, %c0_81, %c0_82] : memref<2x16x1xf32, #tpu.memory_space<vmem>>, vector<1x16x1xf32>
    %60 = vector.shape_cast %59 : vector<1x16x1xf32> to vector<16x1xf32>
    %c1_83 = arith.constant 1 : index
    %c0_84 = arith.constant 0 : index
    %c0_85 = arith.constant 0 : index
    %61 = vector.load %arg3[%c1_83, %c0_84, %c0_85] : memref<2x16x1xf32, #tpu.memory_space<vmem>>, vector<1x16x1xf32>
    %62 = vector.shape_cast %61 : vector<1x16x1xf32> to vector<16x1xf32>
    %63 = vector.extract_strided_slice %56 {offsets = [0, 0], sizes = [16, 384], strides = [1, 1]} : vector<16x768xf32> to vector<16x384xf32>
    %64 = vector.broadcast %57 : vector<1x384xf32> to vector<16x384xf32>
    %65 = arith.mulf %63, %64 : vector<16x384xf32>
    %cst_86 = arith.constant dense<0.000000e+00> : vector<16xf32>
    %66 = vector.multi_reduction <add>, %65, %cst_86 [1] : vector<16x384xf32> to vector<16xf32>
    %67 = vector.shape_cast %66 : vector<16xf32> to vector<16x1xf32>
    %68 = arith.mulf %65, %65 : vector<16x384xf32>
    %cst_87 = arith.constant dense<0.000000e+00> : vector<16xf32>
    %69 = vector.multi_reduction <add>, %68, %cst_87 [1] : vector<16x384xf32> to vector<16xf32>
    %70 = vector.shape_cast %69 : vector<16xf32> to vector<16x1xf32>
    %71 = tpu.concatenate %67, %70 in 1 : vector<16x1xf32>, vector<16x1xf32> -> vector<16x2xf32>
    %cst_88 = arith.constant dense<0.000000e+00> : vector<16x2xf32>
    %72 = tpu.matmul %58, %71, %cst_88 {dimension_numbers = #tpu.dot_dimension_numbers<[1], [0], [0], [1], [0, 0, 1, 1], [], []>} : vector<16x16xf32>, vector<16x2xf32>, vector<16x2xf32> -> vector<16x2xf32>
    %73 = vector.extract_strided_slice %72 {offsets = [0, 0], sizes = [16, 1], strides = [1, 1]} : vector<16x2xf32> to vector<16x1xf32>
    %cst_89 = arith.constant 0.001953125 : f32
    %74 = vector.broadcast %cst_89 : f32 to vector<16x1xf32>
    %75 = arith.mulf %73, %74 : vector<16x1xf32>
    %76 = vector.extract_strided_slice %72 {offsets = [0, 1], sizes = [16, 1], strides = [1, 1]} : vector<16x2xf32> to vector<16x1xf32>
    %cst_90 = arith.constant 0.001953125 : f32
    %77 = vector.broadcast %cst_90 : f32 to vector<16x1xf32>
    %78 = arith.mulf %76, %77 : vector<16x1xf32>
    %79 = arith.mulf %75, %75 : vector<16x1xf32>
    %80 = arith.subf %78, %79 : vector<16x1xf32>
    %cst_91 = arith.constant 9.99999974E-6 : f32
    %81 = vector.broadcast %cst_91 : f32 to vector<16x1xf32>
    %82 = arith.addf %80, %81 : vector<16x1xf32>
    %83 = math.rsqrt %82 : vector<16x1xf32>
    %84 = arith.mulf %60, %83 : vector<16x1xf32>
    %85 = arith.mulf %75, %84 : vector<16x1xf32>
    %86 = arith.subf %62, %85 : vector<16x1xf32>
    %87 = vector.broadcast %84 : vector<16x1xf32> to vector<16x384xf32>
    %88 = arith.mulf %63, %87 : vector<16x384xf32>
    %89 = vector.broadcast %86 : vector<16x1xf32> to vector<16x384xf32>
    %90 = arith.addf %88, %89 : vector<16x384xf32>
    %cst_92 = arith.constant 0.000000e+00 : f32
    %91 = vector.broadcast %cst_92 : f32 to vector<16x384xf32>
    %92 = arith.maximumf %90, %91 : vector<16x384xf32>
    %c0_93 = arith.constant 0 : index
    %c0_94 = arith.constant 0 : index
    %c0_95 = arith.constant 0 : index
    %93 = vector.load %arg6[%c0_93, %c0_94, %c0_95] : memref<2x16x384xf32, #tpu.memory_space<vmem>>, vector<1x16x384xf32>
    %94 = vector.shape_cast %93 : vector<1x16x384xf32> to vector<16x384xf32>
    %95 = vector.shape_cast %92 : vector<16x384xf32> to vector<1x16x384xf32>
    tpu.vector_store %arg6[%c0_93, %c0_94, %c0_95], %95 {strides = array<i32>} : memref<2x16x384xf32, #tpu.memory_space<vmem>>, vector<1x16x384xf32>,
    %96 = vector.extract_strided_slice %56 {offsets = [0, 384], sizes = [16, 384], strides = [1, 1]} : vector<16x768xf32> to vector<16x384xf32>
    %97 = vector.broadcast %57 : vector<1x384xf32> to vector<16x384xf32>
    %98 = arith.mulf %96, %97 : vector<16x384xf32>
    %cst_96 = arith.constant dense<0.000000e+00> : vector<16xf32>
    %99 = vector.multi_reduction <add>, %98, %cst_96 [1] : vector<16x384xf32> to vector<16xf32>
    %100 = vector.shape_cast %99 : vector<16xf32> to vector<16x1xf32>
    %101 = arith.mulf %98, %98 : vector<16x384xf32>
    %cst_97 = arith.constant dense<0.000000e+00> : vector<16xf32>
    %102 = vector.multi_reduction <add>, %101, %cst_97 [1] : vector<16x384xf32> to vector<16xf32>
    %103 = vector.shape_cast %102 : vector<16xf32> to vector<16x1xf32>
    %104 = tpu.concatenate %100, %103 in 1 : vector<16x1xf32>, vector<16x1xf32> -> vector<16x2xf32>
    %cst_98 = arith.constant dense<0.000000e+00> : vector<16x2xf32>
    %105 = tpu.matmul %58, %104, %cst_98 {dimension_numbers = #tpu.dot_dimension_numbers<[1], [0], [0], [1], [0, 0, 1, 1], [], []>} : vector<16x16xf32>, vector<16x2xf32>, vector<16x2xf32> -> vector<16x2xf32>
    %106 = vector.extract_strided_slice %105 {offsets = [0, 0], sizes = [16, 1], strides = [1, 1]} : vector<16x2xf32> to vector<16x1xf32>
    %cst_99 = arith.constant 0.001953125 : f32
    %107 = vector.broadcast %cst_99 : f32 to vector<16x1xf32>
    %108 = arith.mulf %106, %107 : vector<16x1xf32>
    %109 = vector.extract_strided_slice %105 {offsets = [0, 1], sizes = [16, 1], strides = [1, 1]} : vector<16x2xf32> to vector<16x1xf32>
    %cst_100 = arith.constant 0.001953125 : f32
    %110 = vector.broadcast %cst_100 : f32 to vector<16x1xf32>
    %111 = arith.mulf %109, %110 : vector<16x1xf32>
    %112 = arith.mulf %108, %108 : vector<16x1xf32>
    %113 = arith.subf %111, %112 : vector<16x1xf32>
    %cst_101 = arith.constant 9.99999974E-6 : f32
    %114 = vector.broadcast %cst_101 : f32 to vector<16x1xf32>
    %115 = arith.addf %113, %114 : vector<16x1xf32>
    %116 = math.rsqrt %115 : vector<16x1xf32>
    %117 = arith.mulf %60, %116 : vector<16x1xf32>
    %118 = arith.mulf %108, %117 : vector<16x1xf32>
    %119 = arith.subf %62, %118 : vector<16x1xf32>
    %120 = vector.broadcast %117 : vector<16x1xf32> to vector<16x384xf32>
    %121 = arith.mulf %96, %120 : vector<16x384xf32>
    %122 = vector.broadcast %119 : vector<16x1xf32> to vector<16x384xf32>
    %123 = arith.addf %121, %122 : vector<16x384xf32>
    %cst_102 = arith.constant 0.000000e+00 : f32
    %124 = vector.broadcast %cst_102 : f32 to vector<16x384xf32>
    %125 = arith.maximumf %123, %124 : vector<16x384xf32>
    %c1_103 = arith.constant 1 : index
    %c0_104 = arith.constant 0 : index
    %c0_105 = arith.constant 0 : index
    %126 = vector.load %arg6[%c1_103, %c0_104, %c0_105] : memref<2x16x384xf32, #tpu.memory_space<vmem>>, vector<1x16x384xf32>
    %127 = vector.shape_cast %126 : vector<1x16x384xf32> to vector<16x384xf32>
    %128 = vector.shape_cast %125 : vector<16x384xf32> to vector<1x16x384xf32>
    tpu.vector_store %arg6[%c1_103, %c0_104, %c0_105], %128 {strides = array<i32>} : memref<2x16x384xf32, #tpu.memory_space<vmem>>, vector<1x16x384xf32>,
    return
  }
  func.func @transform_0(%arg0: i32) -> (i32, i32, i32) {
    %c0_i32 = arith.constant 0 : i32
    %c0_i32_0 = arith.constant 0 : i32
    %c0_i32_1 = arith.constant 0 : i32
    %c0_i32_2 = arith.constant 0 : i32
    return %c0_i32, %c0_i32_0, %c0_i32_1 : i32, i32, i32
  }
  func.func @transform_1(%arg0: i32) -> (i32, i32) {
    %c0_i32 = arith.constant 0 : i32
    %c0_i32_0 = arith.constant 0 : i32
    %c0_i32_1 = arith.constant 0 : i32
    return %c0_i32, %c0_i32_0 : i32, i32
  }
  func.func @transform_2(%arg0: i32) -> (i32, i32, i32) {
    %c0_i32 = arith.constant 0 : i32
    %c0_i32_0 = arith.constant 0 : i32
    %c0_i32_1 = arith.constant 0 : i32
    %c0_i32_2 = arith.constant 0 : i32
    return %c0_i32, %c0_i32_0, %c0_i32_1 : i32, i32, i32
  }
  func.func @transform_3(%arg0: i32) -> (i32, i32) {
    %c0_i32 = arith.constant 0 : i32
    %c0_i32_0 = arith.constant 0 : i32
    %c0_i32_1 = arith.constant 0 : i32
    return %c0_i32, %c0_i32_0 : i32, i32
  }
  func.func @transform_4(%arg0: i32) -> (i32, i32) {
    %c0_i32 = arith.constant 0 : i32
    %c0_i32_0 = arith.constant 0 : i32
    %c0_i32_1 = arith.constant 0 : i32
    return %c0_i32, %c0_i32_0 : i32, i32
  }
  func.func @transform_5(%arg0: i32) -> (i32, i32, i32) {
    %c0_i32 = arith.constant 0 : i32
    %c0_i32_0 = arith.constant 0 : i32
    %c0_i32_1 = arith.constant 0 : i32
    %c0_i32_2 = arith.constant 0 : i32
    return %c0_i32, %c0_i32_0, %c0_i32_1 : i32, i32, i32
  }
}

</mosaic_0001>

<bundles_post_ra>
// kernel: basic_conv2d_forward.1
= control target key start
LH: loop header
LB: loop body
LE: loop exit
PB: predicated region body
PF: predicated region fallthrough
CT: control target
= control target key end

     0   :  { %s1426_s26 = smov 126   ;;  %s1427_s27 = smov 127   ;;  %v1433_v11 = vmov 0.0   ;;  %vm42_vm0 = vcmask 1039360   ;;  %vm68_vm1 = vcmask 1031168   ;;  %vm94_vm2 = vcmask 900096   ;;  %s1822_s0 = inlined_call_operand.vmem [shape: f32[2,8,512], index: 0, kind: input, shape index: {}]   ;;  %s1823_s1 = inlined_call_operand.vmem [shape: f32[16,72], index: 1, kind: input, shape index: {}]   ;;  %s1824_s3 = inlined_call_operand.vmem [shape: f32[1,384], index: 3, kind: input, shape index: {}]   ;;  %s1825_s4 = inlined_call_operand.vmem [shape: f32[16,16], index: 4, kind: input, shape index: {}]   ;;  %s1826_s2 = inlined_call_operand.vmem [shape: f32[2,16,1], index: 2, kind: input, shape index: {}]   ;;  %s1827_s5 = inlined_call_operand.vmem [shape: f32[2,16,384], index: 5, kind: output, shape index: {}]  }
   0x1   :  { %v1470_v0 = vld [vmem:[%s1822_s0 + $0x8] sm:$0xff]  ;;  %v1475_v1 = vld [vmem:[%s1822_s0 + $0x10] sm:$0xff]  ;;  %v1480_v2 = vld [vmem:[%s1822_s0] sm:$0xff]  ;;  %s1428_s28 = smov 110   ;;  %s1429_s29 = smov 108   ;;  %568 = vmatprep.mubr.f32.mxu0 %v1433_v11  ;;  %645 = vmatprep.mubr.f32.mxu1 %v1433_v11  ;;  %vm120_vm3 = vcmask 891904  }
   0x2   :  { %v1286_v3 = vpack.i.bf16 %v1475_v1, %v1470_v0  ;;  %v1487_v4 = vld [vmem:[%s1822_s0 + $0x20] sm:$0xff]  ;;  %s1430_s30 = smov 109   ;;  %s1431_s6 = smov 91   ;;  %v29_v6 = vld [vmem:[%s1822_s0 + $0x18] sm:$0xff]  ;;  %v1508_v7 = vld [vmem:[%s1822_s0 + $0x28] sm:$0xff]  ;;  %vm146_vm4 = vcmask 883712  }
   0x3   :  { %v1281_v5 = vpack.i.bf16 %v1487_v4, %v1480_v2  ;;  %s1432_s7 = smov 92   ;;  %v1346_v8 = vpack.i.bf16 %v29_v6, %v1508_v7  ;;  %v1515_v9 = vld [vmem:[%s1822_s0 + $0x30] sm:$0xff]  ;;  %v1140_v10 = vld [vmem:[%s1822_s0 + $0x38] sm:$0xff]  ;;  %s1434_s16 = smov 90   ;;  %vm172_vm5 = vcmask 752640   ;;  %vm198_vm6 = vcmask 744448  }
   0x4   :  { %1287 = vrot.lane.b32.xlu1 %v1286_v3, %s1426_s26  ;;  %1277 = vrot.lane.b32.xlu0 %v1286_v3, %s1427_s27  ;;  %v1351_v12 = vpack.i.bf16 %v1140_v10, %v1515_v9  ;;  %vm224_vm7 = vcmask 736256   ;;  %vm497_vm8 = vcmask 588800   ;;  %vm790_vm9 = vcmask 130048  }
   0x5   :  { %vm787_vm10 = vcmask 7168  }
   0x8   :  { %1292 = vrot.lane.b32.xlu1 %v1286_v3, %s1428_s28  ;;  %1282 = vrot.lane.b32.xlu0 %v1281_v5, %s1427_s27 }
   0xc   :  { %1302 = vrot.lane.b32.xlu1 %v1281_v5, %s1428_s28  ;;  %1297 = vrot.lane.b32.xlu0 %v1281_v5, %s1426_s26 }
  0x10   :  { %1312 = vrot.lane.b32.xlu1 %v1286_v3, %s1429_s29  ;;  %1307 = vrot.lane.b32.xlu0 %v1286_v3, %s1430_s30 }
  0x14   :  { %1322 = vrot.lane.b32.xlu1 %v1281_v5, %s1429_s29  ;;  %1317 = vrot.lane.b32.xlu0 %v1281_v5, %s1430_s30 }
  0x18   :  { %1332 = vrot.lane.b32.xlu1 %v1286_v3, %s1431_s6  ;;  %1327 = vrot.lane.b32.xlu0 %v1286_v3, %s1432_s7 }
  0x1c   :  { %1342 = vrot.lane.b32.xlu1 %v1281_v5, %s1431_s6  ;;  %1337 = vrot.lane.b32.xlu0 %v1281_v5, %s1432_s7 }
  0x20   :  { %218 = vrot.lane.b32.xlu1 %v1470_v0, %s1434_s16  ;;  %1347 = vrot.lane.b32.xlu0 %v1346_v8, %s1427_s27 }
  0x24   :  { %1352 = vrot.lane.b32.xlu1 %v1351_v12, %s1427_s27  ;;  %220 = vrot.lane.b32.xlu0 %v1475_v1, %s1434_s16 }
  0x28   :  { %1357 = vrot.lane.b32.xlu1 %v1346_v8, %s1426_s26  ;;  %216 = vrot.lane.b32.xlu0 %v1480_v2, %s1434_s16 }
  0x2c   :  { %1367 = vrot.lane.b32.xlu1 %v1351_v12, %s1426_s26  ;;  %1362 = vrot.lane.b32.xlu0 %v1346_v8, %s1428_s28 }
  0x30   :  { %1377 = vrot.lane.b32.xlu1 %v1346_v8, %s1430_s30  ;;  %1372 = vrot.lane.b32.xlu0 %v1351_v12, %s1428_s28 }
  0x34   :  { %1387 = vrot.lane.b32.xlu1 %v1351_v12, %s1430_s30  ;;  %1382 = vrot.lane.b32.xlu0 %v1346_v8, %s1429_s29 }
  0x38   :  { %1397 = vrot.lane.b32.xlu1 %v1346_v8, %s1432_s7  ;;  %1392 = vrot.lane.b32.xlu0 %v1351_v12, %s1429_s29 }
  0x3c   :  { %1407 = vrot.lane.b32.xlu1 %v1351_v12, %s1432_s7  ;;  %1402 = vrot.lane.b32.xlu0 %v1346_v8, %s1431_s6 }
  0x40   :  { %424 = vrot.lane.b32.xlu1 %v1487_v4, %s1434_s16  ;;  %1412 = vrot.lane.b32.xlu0 %v1351_v12, %s1431_s6 }
  0x44   :  { %222 = vrot.lane.b32.xlu1 %v29_v6, %s1434_s16  ;;  %426 = vrot.lane.b32.xlu0 %v1508_v7, %s1434_s16 }
  0x48   :  { %430 = vrot.lane.b32.xlu1 %v1140_v10, %s1434_s16  ;;  %428 = vrot.lane.b32.xlu0 %v1515_v9, %s1434_s16 }
  0x76   :  { %v1541_v13 = vpop.permute.xlu1 %1287  ;;  %v1543_v14 = vpop.permute.xlu0 %1277 }
  0x77   :  { %v1280_v15 = vunpack.i.h.bf16 %v1543_v14  ;;  %v1279_v16 = vunpack.i.l.bf16 %v1543_v14  ;;  %v1290_v17 = vunpack.i.h.bf16 %v1541_v13  ;;  %v1289_v18 = vunpack.i.l.bf16 %v1541_v13 }
  0x79   :  { %v44_v19 = vsel %vm42_vm0, %v1279_v16, %v1280_v15  ;;  %v70_v27 = vsel %vm68_vm1, %v1289_v18, %v1290_v17 }
  0x7a   :  { %v1552_v20 = vpop.permute.xlu1 %1292  ;;  %v1554_v21 = vpop.permute.xlu0 %1282  ;;  %v1209_v22 = vpack.c.bf16 %v44_v19, %v1470_v0 }
  0x7b   :  { %v1295_v23 = vunpack.i.h.bf16 %v1552_v20  ;;  %v1294_v24 = vunpack.i.l.bf16 %v1552_v20  ;;  %v1284_v25 = vunpack.i.l.bf16 %v1554_v21 }
  0x7c   :  { %1210 = vmatprep.subr.bf16.mxu0 %v1209_v22 }
  0x7d   :  { %v43_v26 = vsel %vm42_vm0, %v1284_v25, %v1279_v16  ;;  %v96_v28 = vsel %vm94_vm2, %v1294_v24, %v1295_v23  ;;  %v1285_v16 = vunpack.i.h.bf16 %v1554_v21 }
  0x7e   :  { %v1567_v29 = vpop.permute.xlu1 %1302  ;;  %v1569_v30 = vpop.permute.xlu0 %1297  ;;  %v1211_v31 = vpack.c.bf16 %v43_v26, %v1480_v2  ;;  %v1213_v32 = vpack.c.bf16 %v96_v28, %v70_v27 }
  0x7f   :  { %v1304_v33 = vunpack.i.l.bf16 %v1567_v29  ;;  %v1299_v34 = vunpack.i.l.bf16 %v1569_v30 }
  0x80   :  { %1212 = vmatpush1.bf16.msra.mxu0 %v1211_v31 }
  0x81   :  { %1214 = vmatprep.subr.bf16.mxu0 %v1213_v32  ;;  %v69_v35 = vsel %vm68_vm1, %v1299_v34, %v1289_v18  ;;  %v95_v36 = vsel %vm94_vm2, %v1304_v33, %v1294_v24 }
  0x82   :  { %v1576_v37 = vpop.permute.xlu1 %1312  ;;  %v1578_v38 = vpop.permute.xlu0 %1307  ;;  %v1215_v39 = vpack.c.bf16 %v95_v36, %v69_v35 }
  0x83   :  { %v1315_v40 = vunpack.i.h.bf16 %v1576_v37  ;;  %v1314_v41 = vunpack.i.l.bf16 %v1576_v37  ;;  %v1310_v42 = vunpack.i.h.bf16 %v1578_v38  ;;  %v1309_v43 = vunpack.i.l.bf16 %v1578_v38 }
  0x84   :  { %1216 = vmatpush1.bf16.msra.mxu0 %v1215_v39 }
  0x85   :  { %v122_v44 = vsel %vm120_vm3, %v1309_v43, %v1310_v42  ;;  %v148_v45 = vsel %vm146_vm4, %v1314_v41, %v1315_v40 }
  0x86   :  { %v1590_v46 = vpop.permute.xlu1 %1322  ;;  %v1592_v47 = vpop.permute.xlu0 %1317  ;;  %v1217_v48 = vpack.c.bf16 %v148_v45, %v122_v44  ;;  %v1648_v45 = vld [vmem:[%s1823_s1 + $0x8] sm:$0xff] }
  0x87   :  { %v1324_v49 = vunpack.i.l.bf16 %v1590_v46  ;;  %v1319_v50 = vunpack.i.l.bf16 %v1592_v47 }
  0x88   :  { %1218 = vmatprep.subr.bf16.mxu0 %v1217_v48 }
  0x89   :  { %v121_v51 = vsel %vm120_vm3, %v1319_v50, %v1309_v43  ;;  %v147_v52 = vsel %vm146_vm4, %v1324_v49, %v1314_v41  ;;  %v1300_v43 = vunpack.i.h.bf16 %v1569_v30 }
  0x8a   :  { %v1598_v53 = vpop.permute.xlu1 %1332  ;;  %v1600_v54 = vpop.permute.xlu0 %1327  ;;  %v1219_v55 = vpack.c.bf16 %v147_v52, %v121_v51 }
  0x8b   :  { %v1335_v56 = vunpack.i.h.bf16 %v1598_v53  ;;  %v1334_v57 = vunpack.i.l.bf16 %v1598_v53  ;;  %v1330_v58 = vunpack.i.h.bf16 %v1600_v54  ;;  %v1329_v59 = vunpack.i.l.bf16 %v1600_v54 }
  0x8c   :  { %1220 = vmatpush1.bf16.msra.mxu0 %v1219_v55 }
  0x8d   :  { %v174_v60 = vsel %vm172_vm5, %v1329_v59, %v1330_v58  ;;  %v200_v61 = vsel %vm198_vm6, %v1334_v57, %v1335_v56 }
  0x8e   :  { %v1612_v62 = vpop.permute.xlu1 %1342  ;;  %v1614_v63 = vpop.permute.xlu0 %1337  ;;  %v1221_v0 = vpack.c.bf16 %v200_v61, %v174_v60 }
  0x8f   :  { %v1344_v2 = vunpack.i.l.bf16 %v1612_v62  ;;  %v1339_v3 = vunpack.i.l.bf16 %v1614_v63 }
  0x90   :  { %1222 = vmatprep.subr.bf16.mxu0 %v1221_v0 }
  0x91   :  { %v173_v5 = vsel %vm172_vm5, %v1339_v3, %v1329_v59  ;;  %v199_v6 = vsel %vm198_vm6, %v1344_v2, %v1334_v57 }
  0x92   :  { %v219_v8 = vpop.permute.xlu1 %218  ;;  %v1348_v10 = vpop.permute.xlu0 %1347  ;;  %v1223_v12 = vpack.c.bf16 %v199_v6, %v173_v5  ;;  %v1320_v6 = vunpack.i.h.bf16 %v1592_v47 }
  0x93   :  { %v1350_v18 = vunpack.i.h.bf16 %v1348_v10  ;;  %v1349_v19 = vunpack.i.l.bf16 %v1348_v10 }
  0x94   :  { %1224 = vmatpush1.bf16.msra.mxu0 %v1223_v12 }
  0x95   :  { %v257_v22 = vsel %vm42_vm0, %v1285_v16, %v1349_v19  ;;  %v45_v24 = vsel %vm42_vm0, %v1280_v15, %v1350_v18  ;;  %v1325_v18 = vunpack.i.h.bf16 %v1590_v46 }
  0x96   :  { %v1353_v25 = vpop.permute.xlu1 %1352  ;;  %v1625_v26 = vpop.permute.xlu0 %220  ;;  %v1225_v27 = vpack.c.bf16 %v257_v22, %v1487_v4  ;;  %v1227_v28 = vpack.c.bf16 %v45_v24, %v1475_v1  ;;  %v1637_v1 = vld [vmem:[%s1823_s1] sm:$0xff] }
  0x97   :  { %v1355_v31 = vunpack.i.h.bf16 %v1353_v25  ;;  %v1354_v32 = vunpack.i.l.bf16 %v1353_v25  ;;  %v226_v21 = vsel %vm224_vm7, %v219_v8, %v1625_v26 }
  0x98   :  { %520 = vmatprep.subr.mxu0 %v226_v21  ;;  %1226 = vmatprep.subr.bf16.mxu1 %v1225_v27 }
  0x99   :  { %v258_v33 = vsel %vm42_vm0, %v1349_v19, %v1354_v32  ;;  %1228 = vmatpush1.bf16.msra.mxu1 %v1227_v28  ;;  %v259_v14 = vsel %vm42_vm0, %v1354_v32, %v1355_v31 }
  0x9a   :  { %v1358_v15 = vpop.permute.xlu1 %1357  ;;  %v217_v34 = vpop.permute.xlu0 %216  ;;  %v1241_v35 = vpack.c.bf16 %v259_v14, %v1515_v9  ;;  %v1243_v36 = vpack.c.bf16 %v258_v33, %v1508_v7  ;;  %v1305_v7 = vunpack.i.h.bf16 %v1567_v29 }
  0x9b   :  { %v225_v4 = vsel %vm224_vm7, %v217_v34, %v219_v8  ;;  %v1360_v39 = vunpack.i.h.bf16 %v1358_v15  ;;  %v1359_v41 = vunpack.i.l.bf16 %v1358_v15 }
  0x9c   :  { %521 = vmatpush1.msra.mxu0 %v225_v4 }
  0x9d   :  { %1242 = vmatprep.subr.bf16.mxu0 %v1241_v35  ;;  %1169 = vmatmul.mubr.msk.f32.vlgmr.msra.gmra.mrb[0].mxu0 %vm497_vm8, %v1637_v1  ;;  %v282_v50 = vsel %vm68_vm1, %v1300_v43, %v1359_v41  ;;  %v71_v30 = vsel %vm68_vm1, %v1290_v17, %v1360_v39 }
  0x9e   :  { %v1368_v9 = vpop.permute.xlu1 %1367  ;;  %v1363_v44 = vpop.permute.xlu0 %1362  ;;  %1244 = vmatpush1.bf16.msra.mxu0 %v1243_v36  ;;  %574 = vmatprep.mubr.f32.mxu0 %v1433_v11 }
  0x9f   :  { %v1365_v48 = vunpack.i.h.bf16 %v1363_v44  ;;  %v1364_v49 = vunpack.i.l.bf16 %v1363_v44  ;;  %v1370_v51 = vunpack.i.h.bf16 %v1368_v9  ;;  %v1369_v52 = vunpack.i.l.bf16 %v1368_v9 }
  0xa0   :  { %v1345_v9 = vunpack.i.h.bf16 %v1612_v62 }
  0xa1   :  { %v307_v55 = vsel %vm94_vm2, %v1305_v7, %v1364_v49  ;;  %v97_v57 = vsel %vm94_vm2, %v1295_v23, %v1365_v48  ;;  %1170 = vmatmul.mubr.msk.f32.gmra.mrb[2].mxu0 %vm497_vm8, %v1648_v45  ;;  %v283_v3 = vsel %vm68_vm1, %v1359_v41, %v1369_v52  ;;  %v284_v23 = vsel %vm68_vm1, %v1369_v52, %v1370_v51 }
  0xa2   :  { %v1378_v29 = vpop.permute.xlu1 %1377  ;;  %v1373_v59 = vpop.permute.xlu0 %1372  ;;  %v1229_v60 = vpack.c.bf16 %v307_v55, %v282_v50  ;;  %v1231_v61 = vpack.c.bf16 %v97_v57, %v71_v30  ;;  %722 = vmatprep.mubr.f32.mxu0 %v1433_v11 }
  0xa3   :  { %v1375_v13 = vunpack.i.h.bf16 %v1373_v59  ;;  %v1374_v0 = vunpack.i.l.bf16 %v1373_v59  ;;  %v1380_v17 = vunpack.i.h.bf16 %v1378_v29  ;;  %v1379_v2 = vunpack.i.l.bf16 %v1378_v29 }
  0xa4   :  { %1230 = vmatprep.subr.bf16.mxu1 %v1229_v60 }
  0xa5   :  { %v308_v20 = vsel %vm94_vm2, %v1364_v49, %v1374_v0  ;;  %1232 = vmatpush1.bf16.msra.mxu1 %v1231_v61  ;;  %v309_v5 = vsel %vm94_vm2, %v1374_v0, %v1375_v13  ;;  %v332_v24 = vsel %vm120_vm3, %v1320_v6, %v1379_v2  ;;  %v123_v25 = vsel %vm120_vm3, %v1310_v42, %v1380_v17 }
  0xa6   :  { %v1247_v8 = vpack.c.bf16 %v308_v20, %v283_v3  ;;  %v1388_v10 = vpop.permute.xlu1 %1387  ;;  %v1383_v12 = vpop.permute.xlu0 %1382  ;;  %v1245_v16 = vpack.c.bf16 %v309_v5, %v284_v23 }
  0xa7   :  { %v1385_v19 = vunpack.i.h.bf16 %v1383_v12  ;;  %v1384_v22 = vunpack.i.l.bf16 %v1383_v12  ;;  %v1390_v27 = vunpack.i.h.bf16 %v1388_v10  ;;  %v1389_v28 = vunpack.i.l.bf16 %v1388_v10  ;;  %v735_v10 = vld [vmem:[%s1824_s3] sm:$0x7] }
  0xa8   :  { %1246 = vmatprep.subr.bf16.mxu0 %v1245_v16 }
  0xa9   :  { %1248 = vmatpush1.bf16.msra.mxu0 %v1247_v8  ;;  %v357_v47 = vsel %vm146_vm4, %v1325_v18, %v1384_v22  ;;  %v149_v31 = vsel %vm146_vm4, %v1315_v40, %v1385_v19  ;;  %v333_v38 = vsel %vm120_vm3, %v1379_v2, %v1389_v28  ;;  %v334_v4 = vsel %vm120_vm3, %v1389_v28, %v1390_v27 }
  0xaa   :  { %v1398_v32 = vpop.permute.xlu1 %1397  ;;  %v1393_v46 = vpop.permute.xlu0 %1392  ;;  %v1233_v21 = vpack.c.bf16 %v357_v47, %v332_v24  ;;  %v1235_v33 = vpack.c.bf16 %v149_v31, %v123_v25  ;;  %v1340_v40 = vunpack.i.h.bf16 %v1614_v63 }
  0xab   :  { %v1395_v14 = vunpack.i.h.bf16 %v1393_v46  ;;  %v1394_v15 = vunpack.i.l.bf16 %v1393_v46  ;;  %v1400_v34 = vunpack.i.h.bf16 %v1398_v32  ;;  %v1399_v35 = vunpack.i.l.bf16 %v1398_v32 }
  0xac   :  { %1234 = vmatprep.subr.bf16.mxu1 %v1233_v21 }
  0xad   :  { %v358_v42 = vsel %vm146_vm4, %v1384_v22, %v1394_v15  ;;  %1236 = vmatpush1.bf16.msra.mxu1 %v1235_v33  ;;  %v359_v37 = vsel %vm146_vm4, %v1394_v15, %v1395_v14  ;;  %v382_v48 = vsel %vm172_vm5, %v1340_v40, %v1399_v35  ;;  %v175_v49 = vsel %vm172_vm5, %v1330_v58, %v1400_v34 }
  0xae   :  { %v1251_v36 = vpack.c.bf16 %v358_v42, %v333_v38  ;;  %v1408_v39 = vpop.permute.xlu1 %1407  ;;  %v1403_v41 = vpop.permute.xlu0 %1402  ;;  %v1249_v43 = vpack.c.bf16 %v359_v37, %v334_v4 }
  0xaf   :  { %v1405_v44 = vunpack.i.h.bf16 %v1403_v41  ;;  %v1404_v7 = vunpack.i.l.bf16 %v1403_v41  ;;  %v1410_v50 = vunpack.i.h.bf16 %v1408_v39  ;;  %v1409_v30 = vunpack.i.l.bf16 %v1408_v39 }
  0xb0   :  { %1250 = vmatprep.subr.bf16.mxu0 %v1249_v43 }
  0xb1   :  { %1252 = vmatpush1.bf16.msra.mxu0 %v1251_v36  ;;  %v407_v63 = vsel %vm198_vm6, %v1345_v9, %v1404_v7  ;;  %v201_v51 = vsel %vm198_vm6, %v1335_v56, %v1405_v44  ;;  %v383_v54 = vsel %vm172_vm5, %v1399_v35, %v1409_v30  ;;  %v384_v60 = vsel %vm172_vm5, %v1409_v30, %v1410_v50 }
  0xb2   :  { %v425_v52 = vpop.permute.xlu1 %424  ;;  %v1413_v62 = vpop.permute.xlu0 %1412  ;;  %v1237_v55 = vpack.c.bf16 %v407_v63, %v382_v48  ;;  %v1239_v57 = vpack.c.bf16 %v201_v51, %v175_v49 }
  0xb3   :  { %v1415_v29 = vunpack.i.h.bf16 %v1413_v62  ;;  %v1414_v59 = vunpack.i.l.bf16 %v1413_v62 }
  0xb4   :  { %1238 = vmatprep.subr.bf16.mxu1 %v1237_v55 }
  0xb5   :  { %v408_v58 = vsel %vm198_vm6, %v1404_v7, %v1414_v59  ;;  %1240 = vmatpush1.bf16.msra.mxu1 %v1239_v57  ;;  %v409_v61 = vsel %vm198_vm6, %v1414_v59, %v1415_v29 }
  0xb6   :  { %v1255_v13 = vpack.c.bf16 %v408_v58, %v383_v54  ;;  %v223_v53 = vpop.permute.xlu1 %222  ;;  %v427_v0 = vpop.permute.xlu0 %426  ;;  %v1253_v56 = vpack.c.bf16 %v409_v61, %v384_v60 }
  0xb7   :  { %v432_v17 = vsel %vm224_vm7, %v425_v52, %v427_v0  ;;  %v227_v2 = vsel %vm224_vm7, %v1625_v26, %v223_v53  ;;  %v744_v26 = vlaneseq }
  0xb8   :  { %597 = vmatprep.subr.mxu1 %v432_v17  ;;  %1254 = vmatprep.subr.bf16.mxu0 %v1253_v56 }
  0xb9   :  { %598 = vmatpush1.msra.mxu1 %v227_v2  ;;  %1256 = vmatpush1.bf16.msra.mxu0 %v1255_v13  ;;  %v745_v6 = vshrl.u32 %v744_v26, 7 }
  0xba   :  { %v431_v3 = vpop.permute.xlu1 %430  ;;  %v429_v20 = vpop.permute.xlu0 %428  ;;  %1171 = vmatmul.mubr.msk.f32.vlgmr.msra.gmra.mrb[0].mxu1 %vm497_vm8, %v1637_v1 }
  0xbb   :  { %v433_v23 = vsel %vm224_vm7, %v427_v0, %v429_v20  ;;  %v434_v5 = vsel %vm224_vm7, %v429_v20, %v431_v3  ;;  %651 = vmatprep.mubr.f32.mxu1 %v1433_v11  ;;  %v746_v8 = vsub.s32 0, %v745_v6  ;;  %v750_v12 = vsub.s32 1, %v745_v6  ;;  %v736_v20 = vld [vmem:[%s1825_s4] sm:$0xff] }
  0xbc   :  { %674 = vmatprep.subr.mxu0 %v434_v5  ;;  %v754_v15 = vsub.s32 2, %v745_v6 }
  0xbd   :  { %675 = vmatpush1.msra.mxu0 %v433_v23  ;;  %v747_v16 = vrot.slane %v735_v10, %v746_v8  ;;  %v751_v18 = vrot.slane %v735_v10, %v750_v12 }
  0xbe   :  { %1172 = vmatmul.mubr.msk.f32.gmra.mrb[2].mxu1 %vm497_vm8, %v1648_v45  ;;  %1173 = vmatmul.mubr.msk.f32.vlgmr.msra.gmra.mrb[4].mxu0 %vm497_vm8, %v1637_v1  ;;  %v755_v34 = vrot.slane %v735_v10, %v754_v15 }
  0xbf   :  { %728 = vmatprep.mubr.f32.mxu0 %v1433_v11  ;;  %1199 = vmatprep.mubr.msk.f32.mxu1 %vm790_vm9, %v736_v20 }
  0xc2   :  { %1174 = vmatmul.mubr.msk.f32.gmra.mrb[6].mxu0 %vm497_vm8, %v1648_v45 }
 0x170   :  { %v1712_v19 = vpop.f32.mrb[0].mxu0 }
 0x171   :  { %v759_v22 = vmul.f32 %v747_v16, %v1712_v19  ;;  %v1715_v1 = vpop.f32.mrb[1].mxu0 }
 0x172   :  { %v760_v11 = vmul.f32 %v751_v18, %v1715_v1 }
 0x173   :  { %v773_v24 = vmul.f32 %v759_v22, %v759_v22 }
 0x174   :  { %v774_v45 = vmul.f32 %v760_v11, %v760_v11  ;;  %v1718_v25 = vpop.f32.mrb[2].mxu0  ;;  %v765_v27 = vadd.f32 %v760_v11, %v759_v22  ;;  %v737_v22 = vld [vmem:[%s1825_s4 + $0x8] sm:$0xff]  ;;  %s1435_s4 = smov 1  }
 0x175   :  { %v762_v28 = vmul.f32 %v747_v16, %v1718_v25  ;;  %v1721_v47 = vpop.f32.mrb[3].mxu0 }
 0x176   :  { %v763_v31 = vmul.f32 %v751_v18, %v1721_v47  ;;  %v779_v32 = vadd.f32 %v774_v45, %v773_v24 }
 0x177   :  { %v776_v46 = vmul.f32 %v762_v28, %v762_v28 }
 0x178   :  { %v777_v21 = vmul.f32 %v763_v31, %v763_v31  ;;  %v769_v33 = vadd.f32 %v763_v31, %v762_v28 }
 0x17a   :  { %v783_v14 = vadd.f32 %v777_v21, %v776_v46 }
 0x18d   :  { %v1724_v35 = vpop.f32.mrb[0].mxu1 }
 0x18e   :  { %v761_v38 = vmul.f32 %v755_v34, %v1724_v35  ;;  %v1727_v42 = vpop.f32.mrb[1].mxu1 }
 0x18f   :  { %v948_v40 = vmul.f32 %v747_v16, %v1727_v42 }
 0x190   :  { %v766_v4 = vadd.f32 %v765_v27, %v761_v38  ;;  %v775_v37 = vmul.f32 %v761_v38, %v761_v38 }
 0x191   :  { %v1730_v36 = vpop.f32.mrb[2].mxu1  ;;  %v1732_v39 = vpop.f32.mrb[4].mxu0  ;;  %v962_v52 = vmul.f32 %v948_v40, %v948_v40 }
 0x192   :  { %v764_v41 = vmul.f32 %v755_v34, %v1730_v36  ;;  %v949_v43 = vmul.f32 %v751_v18, %v1732_v39  ;;  %767 = vadd.xlane.f32.xlu0 %v766_v4  ;;  %v1736_v9 = vpop.f32.mrb[3].mxu1  ;;  %v1738_v44 = vpop.f32.mrb[5].mxu0  ;;  %v780_v7 = vadd.f32 %v779_v32, %v775_v37 }
 0x193   :  { %v951_v48 = vmul.f32 %v747_v16, %v1736_v9  ;;  %v950_v49 = vmul.f32 %v755_v34, %v1738_v44 }
 0x194   :  { %v963_v50 = vmul.f32 %v949_v43, %v949_v43  ;;  %v770_v30 = vadd.f32 %v769_v33, %v764_v41  ;;  %v778_v63 = vmul.f32 %v764_v41, %v764_v41  ;;  %v954_v51 = vadd.f32 %v949_v43, %v948_v40 }
 0x195   :  { %v1742_v62 = vpop.f32.mrb[6].mxu0  ;;  %v964_v55 = vmul.f32 %v950_v49, %v950_v49  ;;  %v965_v61 = vmul.f32 %v951_v48, %v951_v48 }
 0x196   :  { %v952_v57 = vmul.f32 %v751_v18, %v1742_v62  ;;  %781 = vadd.xlane.f32.xlu0 %v780_v7  ;;  %771 = vadd.xlane.f32.xlu1 %v770_v30  ;;  %v1745_v29 = vpop.f32.mrb[7].mxu0  ;;  %v784_v59 = vadd.f32 %v783_v14, %v778_v63  ;;  %v955_v54 = vadd.f32 %v954_v51, %v950_v49  ;;  %v1436_v30 = vmov 0  }
 0x197   :  { %v953_v58 = vmul.f32 %v755_v34, %v1745_v29  ;;  %v968_v60 = vadd.f32 %v963_v50, %v962_v52  ;;  %1416 = vset.pattern.permute.xlu1 %v1436_v30  ;;  %1417 = vset.pattern.permute.xlu0 %v1436_v30 }
 0x198   :  { %v966_v13 = vmul.f32 %v952_v57, %v952_v57  ;;  %v958_v53 = vadd.f32 %v952_v57, %v951_v48 }
 0x199   :  { %v967_v0 = vmul.f32 %v953_v58, %v953_v58  ;;  %v969_v56 = vadd.f32 %v968_v60, %v964_v55 }
 0x19a   :  { %785 = vadd.xlane.f32.xlu0 %v784_v59  ;;  %956 = vadd.xlane.f32.xlu1 %v955_v54  ;;  %v959_v17 = vadd.f32 %v958_v53, %v953_v58  ;;  %v972_v2 = vadd.f32 %v966_v13, %v965_v61  ;;  %v739_v13 = vld [vmem:[%s1826_s2 + $0x8] sm:$0xff]  ;;  %v738_v53 = vld [vmem:[%s1826_s2] sm:$0xff] }
 0x19c   :  { %v973_v3 = vadd.f32 %v972_v2, %v967_v0 }
 0x19e   :  { %970 = vadd.xlane.f32.xlu1 %v969_v56  ;;  %960 = vadd.xlane.f32.xlu0 %v959_v17 }
 0x1a2   :  { %974 = vadd.xlane.f32.xlu0 %v973_v3  ;;  %v1176_v3 = vld [vmem:[%s1826_s2 + $0x18] sm:$0xff] }
 0x21f   :  { %v768_v23 = vpop.xlane.xlu0 %767 }
 0x223   :  { %v782_v5 = vpop.xlane.xlu0 %781  ;;  %v772_v26 = vpop.xlane.xlu1 %771 }
 0x224   :  { %v788_v10 = vsel %vm787_vm10, %v768_v23, %v782_v5  ;;  %v1175_v23 = vld [vmem:[%s1826_s2 + $0x10] sm:$0xff] }
 0x227   :  { %v786_v6 = vpop.xlane.xlu0 %785  ;;  %v957_v8 = vpop.xlane.xlu1 %956 }
 0x228   :  { %v789_v12 = vsel %vm787_vm10, %v772_v26, %v786_v6 }
 0x229   :  { %v1257_v16 = vpack.c.bf16 %v789_v12, %v788_v10 }
 0x22b   :  { %1258 = vmatprep.subr.bf16.mxu1 %v1257_v16  ;;  %v961_v18 = vpop.xlane.xlu0 %960  ;;  %v971_v11 = vpop.xlane.xlu1 %970 }
 0x22c   :  { %1260 = vmatpush3.bf16.msra.mxu1 %v1257_v16  ;;  %v976_v45 = vsel %vm787_vm10, %v957_v8, %v971_v11 }
 0x22f   :  { %1200 = vmatmul.mubr.msk.f32.vlgmr.msra.gmra.mrb[4].mxu1 %vm790_vm9, %v737_v22  ;;  %v975_v24 = vpop.xlane.xlu0 %974 }
 0x230   :  { %v977_v27 = vsel %vm787_vm10, %v961_v18, %v975_v24  ;;  %1206 = vmatprep.mubr.msk.f32.mxu1 %vm790_vm9, %v736_v20 }
 0x231   :  { %v1261_v28 = vpack.c.bf16 %v977_v27, %v976_v45 }
 0x233   :  { %1262 = vmatprep.subr.bf16.mxu1 %v1261_v28 }
 0x234   :  { %1264 = vmatpush3.bf16.msra.mxu1 %v1261_v28 }
 0x237   :  { %1207 = vmatmul.mubr.msk.f32.vlgmr.msra.gmra.mrb[6].mxu1 %vm790_vm9, %v737_v22 }
 0x302   :  { %v1201_v31 = vpop.f32.mrb[4].mxu1 }
 0x303   :  { %v873_v32 = vmul.f32 0.001953125, %v1201_v31  ;;  %v863_v46 = vpop.f32.mrb[5].mxu1 }
 0x304   :  { %v872_v21 = vmul.f32 0.001953125, %v863_v46 }
 0x305   :  { %v875_v33 = vmul.f32 %v873_v32, %v873_v32 }
 0x306   :  { %v874_v14 = vmul.f32 %v872_v21, %v872_v21 }
 0x307   :  { %880 = vrot.lane.b32.xlu0 %v875_v33, %s1435_s4 }
 0x308   :  { %878 = vrot.lane.b32.xlu1 %v874_v14, %s1435_s4 }
 0x30a   :  { %v1208_v15 = vpop.f32.mrb[6].mxu1 }
 0x30b   :  { %v1044_v34 = vpop.f32.mrb[7].mxu1  ;;  %v1054_v4 = vmul.f32 0.001953125, %v1208_v15 }
 0x30c   :  { %v1053_v38 = vmul.f32 0.001953125, %v1044_v34 }
 0x30d   :  { %v1056_v40 = vmul.f32 %v1054_v4, %v1054_v4 }
 0x30e   :  { %v1055_v37 = vmul.f32 %v1053_v38, %v1053_v38 }
 0x310   :  { %1059 = vrot.lane.b32.xlu1 %v1055_v37, %s1435_s4 }
 0x314   :  { %1061 = vrot.lane.b32.xlu1 %v1056_v40, %s1435_s4 }
 0x379   :  { %v881_v41 = vpop.permute.xlu0 %880 }
 0x37a   :  { %v885_v43 = vsub.f32 %v873_v32, %v881_v41  ;;  %v879_v7 = vpop.permute.xlu1 %878 }
 0x37b   :  { %v884_v48 = vsub.f32 %v872_v21, %v879_v7 }
 0x37c   :  { %v887_v49 = vadd.f32 1e-05, %v885_v43 }
 0x37d   :  { %v886_v50 = vadd.f32 1e-05, %v884_v48 }
 0x37e   :  { %1418 = vrsqrt.f32 %v887_v49 }
 0x37f   :  { %1420 = vrsqrt.f32 %v886_v50 }
 0x382   :  { %v1060_v63 = vpop.permute.xlu1 %1059 }
 0x383   :  { %v1065_v51 = vsub.f32 %v1053_v38, %v1060_v63 }
 0x385   :  { %v1067_v52 = vadd.f32 1e-05, %v1065_v51 }
 0x386   :  { %v1062_v55 = vpop.permute.xlu1 %1061 }
 0x387   :  { %1422 = vrsqrt.f32 %v1067_v52  ;;  %v1066_v57 = vsub.f32 %v1054_v4, %v1062_v55 }
 0x388   :  { %v1419_v59 = vpop.eup %1418 }
 0x389   :  { %v1421_v54 = vpop.eup %1420  ;;  %v1068_v58 = vadd.f32 1e-05, %v1066_v57  ;;  %894 = vrot.lane.b32.xlu1 %v1419_v59, %s1427_s27 }
 0x38a   :  { %892 = vrot.lane.b32.xlu0 %v1421_v54, %s1427_s27 }
 0x38b   :  { %1424 = vrsqrt.f32 %v1068_v58 }
 0x391   :  { %v1423_v60 = vpop.eup %1422 }
 0x392   :  { %1073 = vrot.lane.b32.xlu0 %v1423_v60, %s1427_s27 }
 0x395   :  { %v1425_v61 = vpop.eup %1424 }
 0x396   :  { %1075 = vrot.lane.b32.xlu1 %v1425_v61, %s1427_s27 }
 0x3fb   :  { %v895_v0 = vpop.permute.xlu1 %894 }
 0x3fc   :  { %v899_v56 = vmul.f32 %v895_v0, %v739_v13  ;;  %v893_v17 = vpop.permute.xlu0 %892 }
 0x3fd   :  { %v898_v2 = vmul.f32 %v893_v17, %v738_v53 }
 0x3fe   :  { %v901_v20 = vmul.f32 %v899_v56, %v873_v32  ;;  %911 = vperm.xlu1 %1416, %v899_v56  }
 0x3ff   :  { %v900_v5 = vmul.f32 %v898_v2, %v872_v21  ;;  %906 = vperm.xlu0 %1417, %v898_v2  }
 0x400   :  { %v903_v26 = vsub.f32 %v1176_v3, %v901_v20 }
 0x401   :  { %v902_v6 = vsub.f32 %v1175_v23, %v900_v5 }
 0x403   :  { %927 = vperm.xlu0 %1417, %v903_v26   ;;  %922 = vperm.xlu1 %1416, %v902_v6  }
 0x404   :  { %v1074_v8 = vpop.permute.xlu0 %1073 }
 0x405   :  { %v1079_v10 = vmul.f32 %v1074_v8, %v738_v53 }
 0x407   :  { %v1081_v12 = vmul.f32 %v1079_v10, %v1053_v38  ;;  %1087 = vperm.xlu1 %1416, %v1079_v10  }
 0x408   :  { %v1076_v16 = vpop.permute.xlu1 %1075 }
 0x409   :  { %v1080_v18 = vmul.f32 %v1076_v16, %v739_v13  ;;  %v1083_v22 = vsub.f32 %v1175_v23, %v1081_v12 }
 0x40b   :  { %v1082_v11 = vmul.f32 %v1080_v18, %v1054_v4  ;;  %1092 = vperm.xlu0 %1417, %v1080_v18   ;;  %1103 = vperm.xlu1 %1416, %v1083_v22  }
 0x40d   :  { %v1084_v24 = vsub.f32 %v1176_v3, %v1082_v11 }
 0x40f   :  { %1108 = vperm.xlu0 %1417, %v1084_v24  }
 0x47d   :  { %v912_v45 = vpop.permute.xlu1 %911 }
 0x47e   :  { %v907_v27 = vpop.permute.xlu0 %906  ;;  %v917_v28 = vmul.f32 %v912_v45, %v1718_v25  ;;  %v918_v21 = vmul.f32 %v912_v45, %v1721_v47  ;;  %v919_v33 = vmul.f32 %v912_v45, %v1730_v36 }
 0x47f   :  { %v914_v31 = vmul.f32 %v907_v27, %v1712_v19  ;;  %v915_v32 = vmul.f32 %v907_v27, %v1715_v1  ;;  %v916_v46 = vmul.f32 %v907_v27, %v1724_v35 }
 0x482   :  { %v923_v14 = vpop.permute.xlu1 %922  ;;  %v928_v15 = vpop.permute.xlu0 %927 }
 0x483   :  { %v930_v34 = vadd.f32 %v923_v14, %v914_v31  ;;  %v931_v38 = vadd.f32 %v923_v14, %v915_v32  ;;  %v932_v4 = vadd.f32 %v923_v14, %v916_v46  ;;  %v933_v37 = vadd.f32 %v928_v15, %v917_v28 }
 0x484   :  { %v934_v40 = vadd.f32 %v928_v15, %v918_v21  ;;  %v935_v41 = vadd.f32 %v928_v15, %v919_v33 }
 0x485   :  { %v936_v43 = vmax.f32 %v930_v34, 0.0  ;;  %v937_v25 = vmax.f32 %v931_v38, 0.0  ;;  %v938_v7 = vmax.f32 %v932_v4, 0.0  ;;  %v939_v19 = vmax.f32 %v933_v37, 0.0 }
 0x486   :  { %v940_v48 = vmax.f32 %v934_v40, 0.0  ;;  %v941_v1 = vmax.f32 %v935_v41, 0.0  ;;  %v1088_v49 = vpop.permute.xlu1 %1087 }
 0x487   :  { %942 = vst [vmem:[%s1827_s5] sm:$0xff] %v936_v43  ;;  %943 = vst [vmem:[%s1827_s5 + $0x8] sm:$0xff] %v937_v25  ;;  %v1095_v47 = vmul.f32 %v1088_v49, %v1727_v42  ;;  %v1096_v35 = vmul.f32 %v1088_v49, %v1732_v39  ;;  %v1097_v36 = vmul.f32 %v1088_v49, %v1738_v44 }
 0x488   :  { %944 = vst [vmem:[%s1827_s5 + $0x10] sm:$0xff] %v938_v7  ;;  %945 = vst [vmem:[%s1827_s5 + $0x18] sm:$0xff] %v939_v19 }
 0x489   :  { %946 = vst [vmem:[%s1827_s5 + $0x20] sm:$0xff] %v940_v48  ;;  %947 = vst [vmem:[%s1827_s5 + $0x28] sm:$0xff] %v941_v1 }
 0x48a   :  { %v1104_v50 = vpop.permute.xlu1 %1103  ;;  %v1093_v30 = vpop.permute.xlu0 %1092 }
 0x48b   :  { %v1111_v63 = vadd.f32 %v1104_v50, %v1095_v47  ;;  %v1112_v51 = vadd.f32 %v1104_v50, %v1096_v35  ;;  %v1113_v52 = vadd.f32 %v1104_v50, %v1097_v36  ;;  %v1098_v55 = vmul.f32 %v1093_v30, %v1736_v9 }
 0x48c   :  { %v1099_v57 = vmul.f32 %v1093_v30, %v1742_v62  ;;  %v1100_v60 = vmul.f32 %v1093_v30, %v1745_v29 }
 0x48d   :  { %v1117_v59 = vmax.f32 %v1111_v63, 0.0  ;;  %v1118_v54 = vmax.f32 %v1112_v51, 0.0  ;;  %v1119_v58 = vmax.f32 %v1113_v52, 0.0 }
 0x48e   :  { %v1109_v61 = vpop.permute.xlu0 %1108 }
 0x48f   :  { %1181 = vst [vmem:[%s1827_s5 + $0x30] sm:$0xff] %v1117_v59  ;;  %1182 = vst [vmem:[%s1827_s5 + $0x38] sm:$0xff] %v1118_v54  ;;  %v1114_v42 = vadd.f32 %v1109_v61, %v1098_v55  ;;  %v1115_v39 = vadd.f32 %v1109_v61, %v1099_v57  ;;  %v1116_v9 = vadd.f32 %v1109_v61, %v1100_v60 }
 0x490   :  { %1183 = vst [vmem:[%s1827_s5 + $0x40] sm:$0xff] %v1119_v58 }
 0x491   :  { %v1120_v44 = vmax.f32 %v1114_v42, 0.0  ;;  %v1121_v62 = vmax.f32 %v1115_v39, 0.0  ;;  %v1122_v13 = vmax.f32 %v1116_v9, 0.0 }
 0x493   :  { %1184 = vst [vmem:[%s1827_s5 + $0x48] sm:$0xff] %v1120_v44  ;;  %1185 = vst [vmem:[%s1827_s5 + $0x50] sm:$0xff] %v1121_v62 }
 0x494   :  { %1186 = vst [vmem:[%s1827_s5 + $0x58] sm:$0xff] %v1122_v13 }

</bundles_post_ra>
